<compile_context>
chip_gen: v6e
topology: v6e:2x2x1
jax: 0.10.0
libtpu: 0.0.40
codegen_flags: <defaults>
</compile_context>

<pallas_src>
import functools
import math

import jax
import jax.numpy as jnp
from jax import lax
from jax.experimental import pallas as pl
from jax.experimental.pallas import tpu as pltpu


# ---------------------------------------------------------------------------
# Small math helpers shared by the kernels and the plain-JAX references.
# ---------------------------------------------------------------------------
def _layer_norm(x, g, b, eps=1e-12):
    mu = jnp.mean(x, axis=-1, keepdims=True)
    var = jnp.mean(jnp.square(x - mu), axis=-1, keepdims=True)
    return (x - mu) * jax.lax.rsqrt(var + eps) * g + b


def _softmax_last(x):
    m = jnp.max(x, axis=-1, keepdims=True)
    e = jnp.exp(x - m)
    return e / jnp.sum(e, axis=-1, keepdims=True)


def _softmax_last_kernel(x):
    # Same math, but the divide goes to the EUP slot (free during the
    # VPU-heavy softmax epilogue).
    m = jnp.max(x, axis=-1, keepdims=True)
    e = jnp.exp(x - m)
    return e * pl.reciprocal(jnp.sum(e, axis=-1, keepdims=True), approx=True)


def _gelu_tanh(x):
    c = math.sqrt(2.0 / math.pi)
    return 0.5 * x * (1.0 + jnp.tanh(c * (x + 0.044715 * x * x * x)))


def _round_up(n, m):
    return ((n + m - 1) // m) * m


def _nbytes(x):
    return x.size * x.dtype.itemsize


def _vmem_limit_bytes(resident_bytes, per_step_bytes, temp_bytes=0):
    """Scoped-VMEM limit: resident weights (single-buffered) + double-buffered
    per-step blocks + in-kernel temporaries, with headroom.  Capped at v7x's
    64 MiB per-TC VMEM so the same number is safe on every generation."""
    need = resident_bytes + 2 * per_step_bytes + temp_bytes
    need = int(need * 1.25) + (2 << 20)
    return max(16 << 20, min(need, 64 << 20))


def _resident_spec(shape):
    """BlockSpec for a weight that is identical at every grid step.

    Single-buffer it (Buffered(1)) -- the default double buffer would double
    the resident-weight VMEM footprint for nothing."""
    nd = len(shape)
    idx = lambda *_g, _nd=nd: (0,) * _nd
    try:
        return pl.BlockSpec(shape, idx, pipeline_mode=pl.Buffered(1))
    except (AttributeError, TypeError):   # older BlockSpec without pipeline_mode
        return pl.BlockSpec(shape, idx)


# ---------------------------------------------------------------------------
# Pallas kernel 1: fused synthetic ELECTRA encoder layer (stand-in backbone).
# One grid step == one batch element; all math is 2D [S, H] on that element.
# bf16 MXU feeds, f32 accumulation, f32 epilogues.  Emits both the full
# last_hidden_state (bf16) and the pooled last-token row (f32).
# ---------------------------------------------------------------------------
def _encoder_layer_kernel(h_ref, mask_ref, ln_emb_g, ln_emb_b,
                          wq_ref, wk_ref, wv_ref, wo_ref,
                          ln_attn_g, ln_attn_b,
                          w1_ref, b1_ref, w2_ref, b2_ref,
                          ln_ffn_g, ln_ffn_b, o_ref, pooled_ref):
    f32, bf16 = jnp.float32, jnp.bfloat16
    h = _layer_norm(h_ref[0], ln_emb_g[...], ln_emb_b[...])        # [S, H] f32
    seq_len, hdim = h.shape

    # single-head masked self-attention -- bf16 MXU feeds, f32 accumulation
    hb = h.astype(bf16)
    q = jnp.dot(hb, wq_ref[...], preferred_element_type=f32)
    k = jnp.dot(hb, wk_ref[...], preferred_element_type=f32)
    v = jnp.dot(hb, wv_ref[...], preferred_element_type=f32)
    # contract over the feature dim directly on the MXU (no k.T materialization)
    scores = lax.dot_general(
        q.astype(bf16), k.astype(bf16),
        dimension_numbers=(((1,), (1,)), ((), ())),
        preferred_element_type=f32) * (1.0 / math.sqrt(hdim))
    scores = scores + (1.0 - mask_ref[0]) * (-1e9)                 # f32 mask add
    attn = _softmax_last_kernel(scores)                            # f32
    ctx = jnp.dot(attn.astype(bf16), v.astype(bf16), preferred_element_type=f32)
    ctx = jnp.dot(ctx.astype(bf16), wo_ref[...], preferred_element_type=f32)
    h = _layer_norm(h + ctx, ln_attn_g[...], ln_attn_b[...])

    # feed-forward -- bf16 feeds, f32 bias/GELU epilogue
    ff = jnp.dot(h.astype(bf16), w1_ref[...], preferred_element_type=f32) + b1_ref[...]
    ff = _gelu_tanh(ff)
    ff = jnp.dot(ff.astype(bf16), w2_ref[...], preferred_element_type=f32) + b2_ref[...]
    h = _layer_norm(h + ff, ln_ffn_g[...], ln_ffn_b[...])

    o_ref[0] = h.astype(o_ref.dtype)                               # bf16 writeback
    # fused pooling: dec_output.last_hidden_state[:, -1] for the classifier
    # TODO(synk): matches the PyTorch module's [:, -1] exactly (last position,
    # even if it is a padding token).
    pooled_ref[0] = h[seq_len - 1:seq_len, :].astype(pooled_ref.dtype)


def encoder_layer_pallas(p, h_emb, mask_f32):
    """Returns (last_hidden_state [B,S,H] bf16, pooled last token [B,H] f32)."""
    B, S, H = h_emb.shape
    mask3 = mask_f32.reshape(B, 1, S)
    # wq/wk/wv/wo/w1/w2 are stored in bf16 (see init_electra_params); LN params
    # and the FFN biases stay f32 for the f32 epilogue.
    weights = [p["ln_emb_g"], p["ln_emb_b"],
               p["wq"], p["wk"], p["wv"], p["wo"],
               p["ln_attn_g"], p["ln_attn_b"],
               p["w1"], p["b1"], p["w2"], p["b2"],
               p["ln_ffn_g"], p["ln_ffn_b"]]

    in_specs = ([pl.BlockSpec((1, S, H), lambda b: (b, 0, 0)),
                 pl.BlockSpec((1, 1, S), lambda b: (b, 0, 0))]
                + [_resident_spec(w.shape) for w in weights])
    out_specs = [pl.BlockSpec((1, S, H), lambda b: (b, 0, 0)),
                 pl.BlockSpec((1, 1, H), lambda b: (b, 0, 0))]
    out_shape = [jax.ShapeDtypeStruct((B, S, H), jnp.bfloat16),
                 jax.ShapeDtypeStruct((B, 1, H), jnp.float32)]

    resident = sum(_nbytes(w) for w in weights)
    per_step = S * H * 4 + S * 4 + S * H * 2 + H * 4              # h, mask, out, pooled
    temp = 2 * S * S * 4 + S * (4 * H) * 4 + 8 * S * H * 4        # scores/attn/ff/h temps
    vmem_limit = _vmem_limit_bytes(resident, per_step, temp)

    lhs, pooled = pl.pallas_call(
        _encoder_layer_kernel,
        out_shape=out_shape,
        grid=(B,),                      # keep B >= 2 so v7x's second TC is used
        in_specs=in_specs,
        out_specs=out_specs,
        compiler_params=pltpu.CompilerParams(
            dimension_semantics=("parallel",),
            vmem_limit_bytes=vmem_limit),
    )(h_emb, mask3, *weights)
    return lhs, pooled.reshape(B, H)


# ---------------------------------------------------------------------------
# Pallas kernel 2: full multi-layer classifier head on the pooled [B, H] row.
# One pallas_call, all Linear(+ReLU) layers unrolled, activations in vregs.
# Weights are bf16 + lane-dense padded; bias/ReLU epilogue stays f32.
# ---------------------------------------------------------------------------
def _classifier_head_kernel(*refs, num_layers):
    x_ref = refs[0]                         # [B, H] f32 pooled hidden state
    wb = refs[1:1 + 2 * num_layers]         # (w0, b0, w1, b1, ...) lane-dense
    o_ref = refs[1 + 2 * num_layers]        # [B, C_pad] lane-dense logits

    x = x_ref[...].astype(jnp.float32)
    for i in range(num_layers):             # unrolled; activations never leave vregs
        w = wb[2 * i][...]                  # bf16
        b = wb[2 * i + 1][...]              # f32
        y = jnp.dot(x.astype(jnp.bfloat16), w,
                    preferred_element_type=jnp.float32)   # bf16 MXU, f32 acc
        y = y + b                                          # f32 epilogue
        if i != num_layers - 1:
            y = jnp.maximum(y, 0.0)                        # ReLU on hidden layers only
        x = y
    o_ref[...] = x.astype(o_ref.dtype)                     # unmasked lane-dense store


def classifier_head_pallas(pooled, padded_params, num_classes):
    """nn.Sequential classifier head on the pooled last-token hidden state."""
    B, H = pooled.shape
    num_layers = len(padded_params)
    out_pad = padded_params[-1][0].shape[1]

    flat_wb = []
    in_specs = [pl.BlockSpec((B, H), lambda: (0, 0))]
    for (w, b) in padded_params:
        flat_wb += [w, b]
        in_specs += [pl.BlockSpec(w.shape, lambda: (0, 0)),
                     pl.BlockSpec(b.shape, lambda: (0, 0))]

    resident = sum(_nbytes(a) for a in flat_wb)
    per_step = B * H * 4 + B * out_pad * 4
    vmem_limit = _vmem_limit_bytes(resident, per_step, temp_bytes=B * out_pad * 8)

    kernel = functools.partial(_classifier_head_kernel, num_layers=num_layers)
    out = pl.pallas_call(
        kernel,
        out_shape=jax.ShapeDtypeStruct((B, out_pad), jnp.float32),
        in_specs=in_specs,
        out_specs=pl.BlockSpec((B, out_pad), lambda: (0, 0)),
        compiler_params=pltpu.CompilerParams(vmem_limit_bytes=vmem_limit),
    )(pooled, *flat_wb)
    return out[:, :num_classes]


# ---------------------------------------------------------------------------
# Parameter construction (mirrors get_classifier shapes) + lane-dense padding.
# ---------------------------------------------------------------------------
def init_classifier_params(key, input_size, num_classes, hidden_size,
                           num_layers, bias):
    dims = []
    if num_layers == 1:
        dims = [(input_size, num_classes)]
    else:
        for i in range(num_layers):
            in_dim = input_size if i == 0 else hidden_size
            out_dim = num_classes if i == num_layers - 1 else hidden_size
            dims.append((in_dim, out_dim))
    params = []
    for (in_dim, out_dim) in dims:
        key, kw, kb = jax.random.split(key, 3)
        w = jax.random.normal(kw, (in_dim, out_dim), jnp.float32) * 0.02
        b = (jax.random.normal(kb, (out_dim,), jnp.float32) * 0.1
             if bias else jnp.zeros((out_dim,), jnp.float32))
        params.append((w, b))
    return params


def pad_classifier_params(params):
    """Pad each layer's output dim to a multiple of 128 (lane-dense stores) and
    store the weights in bf16 (halves the HBM-bound head weight traffic)."""
    padded = []
    prev = params[0][0].shape[0]          # raw input dim from the pooled hidden state
    for (w, b) in params:
        in_dim, out_dim = w.shape
        out_pad = _round_up(out_dim, 128)
        w_p = jnp.zeros((prev, out_pad), jnp.float32).at[:in_dim, :out_dim].set(w)
        b_p = jnp.zeros((1, out_pad), jnp.float32).at[0, :out_dim].set(b)
        padded.append((w_p.astype(jnp.bfloat16), b_p))   # bf16 weights, f32 bias
        prev = out_pad
    return padded


def init_electra_params(key, vocab_size, max_pos, type_vocab, hidden):
    def nrm(k, shape, scale=0.02):
        return jax.random.normal(k, shape, jnp.float32) * scale

    ks = jax.random.split(key, 16)
    h, f = hidden, 4 * hidden
    bf16 = jnp.bfloat16
    return {
        "word_emb": nrm(ks[0], (vocab_size, h)),
        "pos_emb": nrm(ks[1], (max_pos, h)),
        "type_emb": nrm(ks[2], (type_vocab, h)),
        "ln_emb_g": 1.0 + nrm(ks[3], (1, h), 0.1),
        "ln_emb_b": nrm(ks[4], (1, h), 0.1),
        # MXU-fed weights live in bf16 (halves resident VMEM/HBM footprint,
        # native bf16 MXU pass).  LN params / FFN biases stay f32.
        "wq": nrm(ks[5], (h, h)).astype(bf16), "wk": nrm(ks[6], (h, h)).astype(bf16),
        "wv": nrm(ks[7], (h, h)).astype(bf16), "wo": nrm(ks[8], (h, h)).astype(bf16),
        "ln_attn_g": 1.0 + nrm(ks[9], (1, h), 0.1),
        "ln_attn_b": nrm(ks[10], (1, h), 0.1),
        "w1": nrm(ks[11], (h, f)).astype(bf16), "b1": nrm(ks[12], (1, f), 0.1),
        "w2": nrm(ks[13], (f, h)).astype(bf16), "b2": nrm(ks[14], (1, h), 0.1),
        "ln_ffn_g": 1.0 + nrm(ks[15], (1, h), 0.1),
        "ln_ffn_b": jnp.zeros((1, h), jnp.float32),
    }


def embed(p, input_ids, token_type_ids):
    S = input_ids.shape[1]
    pos = jnp.arange(S, dtype=jnp.int32)
    return (p["word_emb"][input_ids]
            + p["pos_emb"][pos][None, :, :]
            + p["type_emb"][token_type_ids])


# ---------------------------------------------------------------------------
# ElectraClassifier.forward
# ---------------------------------------------------------------------------
def electra_classifier_forward(electra_params, clf_params_padded, num_classes,
                               input_ids, attention_mask, token_type_ids):
    h_emb = embed(electra_params, input_ids, token_type_ids)
    last_hidden_state, pooled = encoder_layer_pallas(
        electra_params, h_emb, attention_mask.astype(jnp.float32))
    del last_hidden_state           # classifier only needs last_hidden_state[:, -1]
    return classifier_head_pallas(pooled, clf_params_padded, num_classes)


# ---------------------------------------------------------------------------
# Plain-JAX references (for cross-checking only).
# ---------------------------------------------------------------------------
def encoder_layer_ref(p, h_emb, mask_f32):
    f32 = jnp.float32
    H = h_emb.shape[-1]
    h = _layer_norm(h_emb, p["ln_emb_g"], p["ln_emb_b"])
    q = h @ p["wq"].astype(f32); k = h @ p["wk"].astype(f32); v = h @ p["wv"].astype(f32)
    scores = jnp.einsum("bqd,bkd->bqk", q, k) * (1.0 / math.sqrt(H))
    scores = scores + (1.0 - mask_f32)[:, None, :] * (-1e9)
    attn = _softmax_last(scores)
    ctx = jnp.einsum("bqk,bkd->bqd", attn, v) @ p["wo"].astype(f32)
    h = _layer_norm(h + ctx, p["ln_attn_g"], p["ln_attn_b"])
    ff = _gelu_tanh(h @ p["w1"].astype(f32) + p["b1"]) @ p["w2"].astype(f32) + p["b2"]
    return _layer_norm(h + ff, p["ln_ffn_g"], p["ln_ffn_b"])


def classifier_ref(params, x):
    n = len(params)
    for i, (w, b) in enumerate(params):
        x = x @ w + b
        if i != n - 1:
            x = jnp.maximum(x, 0.0)
    return x


if __name__ == "__main__":
    B, S = 2, 8                      # batch (>=2 keeps v7x's 2nd TC busy), seq len
    VOCAB, TYPE_VOCAB, MAX_POS = 50, 2, 64
    HIDDEN = 32                      # stands in for linear_input_size=768
    NUM_CLASSES = 4
    HIDDEN_SIZE = 16                 # multi-layer-head hidden size (stands in for 4026)

    key = jax.random.PRNGKey(0)
    k_enc, k_clf1, k_clf2, k_ids, k_typ = jax.random.split(key, 5)

    electra_params = init_electra_params(k_enc, VOCAB, MAX_POS, TYPE_VOCAB, HIDDEN)
    clf1 = init_classifier_params(k_clf1, HIDDEN, NUM_CLASSES, HIDDEN_SIZE,
                                  num_layers=1, bias=True)      # module defaults
    clf1_padded = pad_classifier_params(clf1)

    input_ids = jax.random.randint(k_ids, (B, S), 0, VOCAB, dtype=jnp.int32)
    token_type_ids = jax.random.randint(k_typ, (B, S), 0, TYPE_VOCAB, dtype=jnp.int32)
    attention_mask = jnp.concatenate(
        [jnp.ones((B, S - 2), jnp.int32), jnp.zeros((B, 2), jnp.int32)], axis=1)

    fwd = jax.jit(electra_classifier_forward, static_argnums=(2,))
    logits = fwd(electra_params, clf1_padded, NUM_CLASSES,
                 input_ids, attention_mask, token_type_ids)
    logits = jax.block_until_ready(logits)
    assert logits.shape == (B, NUM_CLASSES)

    # ---- cross-checks against plain-JAX references --------------------------
    mask_f32 = attention_mask.astype(jnp.float32)
    h_emb = embed(electra_params, input_ids, token_type_ids)
    lhs_ref = encoder_layer_ref(electra_params, h_emb, mask_f32)
    logits_ref = classifier_ref(clf1, lhs_ref[:, -1])
    assert jnp.allclose(logits, logits_ref, atol=5e-2, rtol=5e-2)

    lhs_kernel, pooled_kernel = encoder_layer_pallas(electra_params, h_emb, mask_f32)
    assert jnp.allclose(lhs_kernel.astype(jnp.float32), lhs_ref, atol=5e-2, rtol=5e-2)
    assert jnp.allclose(pooled_kernel, lhs_ref[:, -1], atol=5e-2, rtol=5e-2)

    # multi-layer head (num_layers=2) fused into a single pallas_call
    clf2 = init_classifier_params(k_clf2, HIDDEN, NUM_CLASSES, HIDDEN_SIZE,
                                  num_layers=2, bias=True)
    logits2 = classifier_head_pallas(pooled_kernel, pad_classifier_params(clf2),
                                     NUM_CLASSES)
    logits2_ref = classifier_ref(clf2, pooled_kernel)
    assert jnp.allclose(logits2, logits2_ref, atol=5e-2, rtol=5e-2)

    print("KERNEL_OK")
</pallas_src>

<mosaic_0001>
module attributes {stable_mosaic.version = 11 : i64} {
  func.func @_classifier_head_kernel(%arg0: memref<2x32xf32, #tpu.memory_space<vmem>>, %arg1: memref<32x128xbf16, #tpu.memory_space<vmem>>, %arg2: memref<1x128xf32, #tpu.memory_space<vmem>>, %arg3: memref<2x128xf32, #tpu.memory_space<vmem>>) attributes {dimension_semantics = [], scalar_prefetch = 0 : i64, scratch_operands = 0 : i64, tpu.core_type = #tpu.core_type<tc>} {
    %c0 = arith.constant 0 : index
    %c0_0 = arith.constant 0 : index
    %0 = vector.load %arg0[%c0, %c0_0] : memref<2x32xf32, #tpu.memory_space<vmem>>, vector<2x32xf32>
    %c0_1 = arith.constant 0 : index
    %c0_2 = arith.constant 0 : index
    %1 = vector.load %arg1[%c0_1, %c0_2] : memref<32x128xbf16, #tpu.memory_space<vmem>>, vector<32x128xbf16>
    %c0_3 = arith.constant 0 : index
    %c0_4 = arith.constant 0 : index
    %2 = vector.load %arg2[%c0_3, %c0_4] : memref<1x128xf32, #tpu.memory_space<vmem>>, vector<1x128xf32>
    %3 = arith.truncf %0 : vector<2x32xf32> to vector<2x32xbf16>
    %cst = arith.constant dense<0.000000e+00> : vector<2x128xf32>
    %4 = tpu.matmul %3, %1, %cst {dimension_numbers = #tpu.dot_dimension_numbers<[1], [0], [0], [1], [0, 0, 1, 1], [], []>} : vector<2x32xbf16>, vector<32x128xbf16>, vector<2x128xf32> -> vector<2x128xf32>
    %5 = vector.broadcast %2 : vector<1x128xf32> to vector<2x128xf32>
    %6 = arith.addf %4, %5 : vector<2x128xf32>
    %c0_5 = arith.constant 0 : index
    %c0_6 = arith.constant 0 : index
    %7 = vector.load %arg3[%c0_5, %c0_6] : memref<2x128xf32, #tpu.memory_space<vmem>>, vector<2x128xf32>
    tpu.vector_store %arg3[%c0_5, %c0_6], %6 {strides = array<i32>} : memref<2x128xf32, #tpu.memory_space<vmem>>, vector<2x128xf32>,
    return
  }
}

module attributes {stable_mosaic.version = 11 : i64} {
  func.func @_encoder_layer_kernel(%arg0: i32, %arg1: memref<1x8x32xf32, #tpu.memory_space<vmem>>, %arg2: memref<1x1x8xf32, #tpu.memory_space<vmem>>, %arg3: memref<1x32xf32, #tpu.memory_space<vmem>>, %arg4: memref<1x32xf32, #tpu.memory_space<vmem>>, %arg5: memref<32x32xbf16, #tpu.memory_space<vmem>>, %arg6: memref<32x32xbf16, #tpu.memory_space<vmem>>, %arg7: memref<32x32xbf16, #tpu.memory_space<vmem>>, %arg8: memref<32x32xbf16, #tpu.memory_space<vmem>>, %arg9: memref<1x32xf32, #tpu.memory_space<vmem>>, %arg10: memref<1x32xf32, #tpu.memory_space<vmem>>, %arg11: memref<32x128xbf16, #tpu.memory_space<vmem>>, %arg12: memref<1x128xf32, #tpu.memory_space<vmem>>, %arg13: memref<128x32xbf16, #tpu.memory_space<vmem>>, %arg14: memref<1x32xf32, #tpu.memory_space<vmem>>, %arg15: memref<1x32xf32, #tpu.memory_space<vmem>>, %arg16: memref<1x32xf32, #tpu.memory_space<vmem>>, %arg17: memref<1x8x32xbf16, #tpu.memory_space<vmem>>, %arg18: memref<1x1x32xf32, #tpu.memory_space<vmem>>) attributes {dimension_semantics = [#tpu.dimension_semantics<parallel>], iteration_bounds = array<i64: 2>, scalar_prefetch = 0 : i64, scratch_operands = 0 : i64, tpu.core_type = #tpu.core_type<tc>, window_params = [{transform_indices = @transform_0, window_bounds = array<i64: 1, 8, 32>}, {transform_indices = @transform_1, window_bounds = array<i64: 1, 1, 8>}, {pipeline_mode = #tpu.pipeline_mode<synchronous>, transform_indices = @transform_2, window_bounds = array<i64: 1, 32>}, {pipeline_mode = #tpu.pipeline_mode<synchronous>, transform_indices = @transform_3, window_bounds = array<i64: 1, 32>}, {pipeline_mode = #tpu.pipeline_mode<synchronous>, transform_indices = @transform_4, window_bounds = array<i64: 32, 32>}, {pipeline_mode = #tpu.pipeline_mode<synchronous>, transform_indices = @transform_5, window_bounds = array<i64: 32, 32>}, {pipeline_mode = #tpu.pipeline_mode<synchronous>, transform_indices = @transform_6, window_bounds = array<i64: 32, 32>}, {pipeline_mode = #tpu.pipeline_mode<synchronous>, transform_indices = @transform_7, window_bounds = array<i64: 32, 32>}, {pipeline_mode = #tpu.pipeline_mode<synchronous>, transform_indices = @transform_8, window_bounds = array<i64: 1, 32>}, {pipeline_mode = #tpu.pipeline_mode<synchronous>, transform_indices = @transform_9, window_bounds = array<i64: 1, 32>}, {pipeline_mode = #tpu.pipeline_mode<synchronous>, transform_indices = @transform_10, window_bounds = array<i64: 32, 128>}, {pipeline_mode = #tpu.pipeline_mode<synchronous>, transform_indices = @transform_11, window_bounds = array<i64: 1, 128>}, {pipeline_mode = #tpu.pipeline_mode<synchronous>, transform_indices = @transform_12, window_bounds = array<i64: 128, 32>}, {pipeline_mode = #tpu.pipeline_mode<synchronous>, transform_indices = @transform_13, window_bounds = array<i64: 1, 32>}, {pipeline_mode = #tpu.pipeline_mode<synchronous>, transform_indices = @transform_14, window_bounds = array<i64: 1, 32>}, {pipeline_mode = #tpu.pipeline_mode<synchronous>, transform_indices = @transform_15, window_bounds = array<i64: 1, 32>}, {transform_indices = @transform_16, window_bounds = array<i64: 1, 8, 32>}, {transform_indices = @transform_17, window_bounds = array<i64: 1, 1, 32>}]} {
    %c0 = arith.constant 0 : index
    %c0_0 = arith.constant 0 : index
    %c0_1 = arith.constant 0 : index
    %0 = vector.load %arg1[%c0, %c0_0, %c0_1] : memref<1x8x32xf32, #tpu.memory_space<vmem>>, vector<1x8x32xf32>
    %1 = vector.shape_cast %0 : vector<1x8x32xf32> to vector<8x32xf32>
    %c0_2 = arith.constant 0 : index
    %c0_3 = arith.constant 0 : index
    %2 = vector.load %arg3[%c0_2, %c0_3] : memref<1x32xf32, #tpu.memory_space<vmem>>, vector<1x32xf32>
    %c0_4 = arith.constant 0 : index
    %c0_5 = arith.constant 0 : index
    %3 = vector.load %arg4[%c0_4, %c0_5] : memref<1x32xf32, #tpu.memory_space<vmem>>, vector<1x32xf32>
    %cst = arith.constant dense<0.000000e+00> : vector<8xf32>
    %4 = vector.multi_reduction <add>, %1, %cst [1] : vector<8x32xf32> to vector<8xf32>
    %5 = vector.shape_cast %4 : vector<8xf32> to vector<8x1xf32>
    %cst_6 = arith.constant 3.200000e+01 : f32
    %6 = vector.broadcast %cst_6 : f32 to vector<8x1xf32>
    %7 = arith.divf %5, %6 : vector<8x1xf32>
    %8 = vector.broadcast %7 : vector<8x1xf32> to vector<8x32xf32>
    %9 = arith.subf %1, %8 : vector<8x32xf32>
    %10 = arith.mulf %9, %9 : vector<8x32xf32>
    %cst_7 = arith.constant dense<0.000000e+00> : vector<8xf32>
    %11 = vector.multi_reduction <add>, %10, %cst_7 [1] : vector<8x32xf32> to vector<8xf32>
    %12 = vector.shape_cast %11 : vector<8xf32> to vector<8x1xf32>
    %cst_8 = arith.constant 3.200000e+01 : f32
    %13 = vector.broadcast %cst_8 : f32 to vector<8x1xf32>
    %14 = arith.divf %12, %13 : vector<8x1xf32>
    %15 = vector.broadcast %7 : vector<8x1xf32> to vector<8x32xf32>
    %16 = arith.subf %1, %15 : vector<8x32xf32>
    %cst_9 = arith.constant 9.99999996E-13 : f32
    %17 = vector.broadcast %cst_9 : f32 to vector<8x1xf32>
    %18 = arith.addf %14, %17 : vector<8x1xf32>
    %19 = math.rsqrt %18 : vector<8x1xf32>
    %20 = vector.broadcast %19 : vector<8x1xf32> to vector<8x32xf32>
    %21 = arith.mulf %16, %20 : vector<8x32xf32>
    %22 = vector.broadcast %2 : vector<1x32xf32> to vector<8x32xf32>
    %23 = arith.mulf %21, %22 : vector<8x32xf32>
    %24 = vector.broadcast %3 : vector<1x32xf32> to vector<8x32xf32>
    %25 = arith.addf %23, %24 : vector<8x32xf32>
    %26 = arith.truncf %25 : vector<8x32xf32> to vector<8x32xbf16>
    %c0_10 = arith.constant 0 : index
    %c0_11 = arith.constant 0 : index
    %27 = vector.load %arg5[%c0_10, %c0_11] : memref<32x32xbf16, #tpu.memory_space<vmem>>, vector<32x32xbf16>
    %cst_12 = arith.constant dense<0.000000e+00> : vector<8x32xf32>
    %28 = tpu.matmul %26, %27, %cst_12 {dimension_numbers = #tpu.dot_dimension_numbers<[1], [0], [0], [1], [0, 0, 1, 1], [], []>} : vector<8x32xbf16>, vector<32x32xbf16>, vector<8x32xf32> -> vector<8x32xf32>
    %c0_13 = arith.constant 0 : index
    %c0_14 = arith.constant 0 : index
    %29 = vector.load %arg6[%c0_13, %c0_14] : memref<32x32xbf16, #tpu.memory_space<vmem>>, vector<32x32xbf16>
    %cst_15 = arith.constant dense<0.000000e+00> : vector<8x32xf32>
    %30 = tpu.matmul %26, %29, %cst_15 {dimension_numbers = #tpu.dot_dimension_numbers<[1], [0], [0], [1], [0, 0, 1, 1], [], []>} : vector<8x32xbf16>, vector<32x32xbf16>, vector<8x32xf32> -> vector<8x32xf32>
    %c0_16 = arith.constant 0 : index
    %c0_17 = arith.constant 0 : index
    %31 = vector.load %arg7[%c0_16, %c0_17] : memref<32x32xbf16, #tpu.memory_space<vmem>>, vector<32x32xbf16>
    %cst_18 = arith.constant dense<0.000000e+00> : vector<8x32xf32>
    %32 = tpu.matmul %26, %31, %cst_18 {dimension_numbers = #tpu.dot_dimension_numbers<[1], [0], [0], [1], [0, 0, 1, 1], [], []>} : vector<8x32xbf16>, vector<32x32xbf16>, vector<8x32xf32> -> vector<8x32xf32>
    %33 = arith.truncf %28 : vector<8x32xf32> to vector<8x32xbf16>
    %34 = arith.truncf %30 : vector<8x32xf32> to vector<8x32xbf16>
    %cst_19 = arith.constant dense<0.000000e+00> : vector<8x8xf32>
    %35 = tpu.matmul %33, %34, %cst_19 {dimension_numbers = #tpu.dot_dimension_numbers<[1], [1], [0], [0], [0, 0, 1, 0], [], []>} : vector<8x32xbf16>, vector<8x32xbf16>, vector<8x8xf32> -> vector<8x8xf32>
    %cst_20 = arith.constant 0.176776692 : f32
    %36 = vector.broadcast %cst_20 : f32 to vector<8x8xf32>
    %37 = arith.mulf %35, %36 : vector<8x8xf32>
    %c0_21 = arith.constant 0 : index
    %c0_22 = arith.constant 0 : index
    %c0_23 = arith.constant 0 : index
    %38 = vector.load %arg2[%c0_21, %c0_22, %c0_23] : memref<1x1x8xf32, #tpu.memory_space<vmem>>, vector<1x1x8xf32>
    %39 = vector.shape_cast %38 : vector<1x1x8xf32> to vector<1x8xf32>
    %cst_24 = arith.constant 1.000000e+00 : f32
    %40 = vector.broadcast %cst_24 : f32 to vector<1x8xf32>
    %41 = arith.subf %40, %39 : vector<1x8xf32>
    %cst_25 = arith.constant -1.000000e+09 : f32
    %42 = vector.broadcast %cst_25 : f32 to vector<1x8xf32>
    %43 = arith.mulf %41, %42 : vector<1x8xf32>
    %44 = vector.broadcast %43 : vector<1x8xf32> to vector<8x8xf32>
    %45 = arith.addf %37, %44 : vector<8x8xf32>
    %cst_26 = arith.constant dense<0xFF800000> : vector<8xf32>
    %46 = vector.multi_reduction <maximumf>, %45, %cst_26 [1] : vector<8x8xf32> to vector<8xf32>
    %47 = vector.shape_cast %46 : vector<8xf32> to vector<8x1xf32>
    %48 = vector.broadcast %47 : vector<8x1xf32> to vector<8x8xf32>
    %49 = arith.subf %45, %48 : vector<8x8xf32>
    %50 = math.exp %49 : vector<8x8xf32>
    %cst_27 = arith.constant dense<0.000000e+00> : vector<8xf32>
    %51 = vector.multi_reduction <add>, %50, %cst_27 [1] : vector<8x8xf32> to vector<8xf32>
    %52 = vector.shape_cast %51 : vector<8xf32> to vector<8x1xf32>
    %53 = tpu.reciprocal %52 {approx = true} : vector<8x1xf32> -> vector<8x1xf32>
    %54 = vector.broadcast %53 : vector<8x1xf32> to vector<8x8xf32>
    %55 = arith.mulf %50, %54 : vector<8x8xf32>
    %56 = arith.truncf %55 : vector<8x8xf32> to vector<8x8xbf16>
    %57 = arith.truncf %32 : vector<8x32xf32> to vector<8x32xbf16>
    %cst_28 = arith.constant dense<0.000000e+00> : vector<8x32xf32>
    %58 = tpu.matmul %56, %57, %cst_28 {dimension_numbers = #tpu.dot_dimension_numbers<[1], [0], [0], [1], [0, 0, 1, 1], [], []>} : vector<8x8xbf16>, vector<8x32xbf16>, vector<8x32xf32> -> vector<8x32xf32>
    %59 = arith.truncf %58 : vector<8x32xf32> to vector<8x32xbf16>
    %c0_29 = arith.constant 0 : index
    %c0_30 = arith.constant 0 : index
    %60 = vector.load %arg8[%c0_29, %c0_30] : memref<32x32xbf16, #tpu.memory_space<vmem>>, vector<32x32xbf16>
    %cst_31 = arith.constant dense<0.000000e+00> : vector<8x32xf32>
    %61 = tpu.matmul %59, %60, %cst_31 {dimension_numbers = #tpu.dot_dimension_numbers<[1], [0], [0], [1], [0, 0, 1, 1], [], []>} : vector<8x32xbf16>, vector<32x32xbf16>, vector<8x32xf32> -> vector<8x32xf32>
    %62 = arith.addf %25, %61 : vector<8x32xf32>
    %c0_32 = arith.constant 0 : index
    %c0_33 = arith.constant 0 : index
    %63 = vector.load %arg9[%c0_32, %c0_33] : memref<1x32xf32, #tpu.memory_space<vmem>>, vector<1x32xf32>
    %c0_34 = arith.constant 0 : index
    %c0_35 = arith.constant 0 : index
    %64 = vector.load %arg10[%c0_34, %c0_35] : memref<1x32xf32, #tpu.memory_space<vmem>>, vector<1x32xf32>
    %cst_36 = arith.constant dense<0.000000e+00> : vector<8xf32>
    %65 = vector.multi_reduction <add>, %62, %cst_36 [1] : vector<8x32xf32> to vector<8xf32>
    %66 = vector.shape_cast %65 : vector<8xf32> to vector<8x1xf32>
    %cst_37 = arith.constant 3.200000e+01 : f32
    %67 = vector.broadcast %cst_37 : f32 to vector<8x1xf32>
    %68 = arith.divf %66, %67 : vector<8x1xf32>
    %69 = vector.broadcast %68 : vector<8x1xf32> to vector<8x32xf32>
    %70 = arith.subf %62, %69 : vector<8x32xf32>
    %71 = arith.mulf %70, %70 : vector<8x32xf32>
    %cst_38 = arith.constant dense<0.000000e+00> : vector<8xf32>
    %72 = vector.multi_reduction <add>, %71, %cst_38 [1] : vector<8x32xf32> to vector<8xf32>
    %73 = vector.shape_cast %72 : vector<8xf32> to vector<8x1xf32>
    %cst_39 = arith.constant 3.200000e+01 : f32
    %74 = vector.broadcast %cst_39 : f32 to vector<8x1xf32>
    %75 = arith.divf %73, %74 : vector<8x1xf32>
    %76 = vector.broadcast %68 : vector<8x1xf32> to vector<8x32xf32>
    %77 = arith.subf %62, %76 : vector<8x32xf32>
    %cst_40 = arith.constant 9.99999996E-13 : f32
    %78 = vector.broadcast %cst_40 : f32 to vector<8x1xf32>
    %79 = arith.addf %75, %78 : vector<8x1xf32>
    %80 = math.rsqrt %79 : vector<8x1xf32>
    %81 = vector.broadcast %80 : vector<8x1xf32> to vector<8x32xf32>
    %82 = arith.mulf %77, %81 : vector<8x32xf32>
    %83 = vector.broadcast %63 : vector<1x32xf32> to vector<8x32xf32>
    %84 = arith.mulf %82, %83 : vector<8x32xf32>
    %85 = vector.broadcast %64 : vector<1x32xf32> to vector<8x32xf32>
    %86 = arith.addf %84, %85 : vector<8x32xf32>
    %87 = arith.truncf %86 : vector<8x32xf32> to vector<8x32xbf16>
    %c0_41 = arith.constant 0 : index
    %c0_42 = arith.constant 0 : index
    %88 = vector.load %arg11[%c0_41, %c0_42] : memref<32x128xbf16, #tpu.memory_space<vmem>>, vector<32x128xbf16>
    %cst_43 = arith.constant dense<0.000000e+00> : vector<8x128xf32>
    %89 = tpu.matmul %87, %88, %cst_43 {dimension_numbers = #tpu.dot_dimension_numbers<[1], [0], [0], [1], [0, 0, 1, 1], [], []>} : vector<8x32xbf16>, vector<32x128xbf16>, vector<8x128xf32> -> vector<8x128xf32>
    %c0_44 = arith.constant 0 : index
    %c0_45 = arith.constant 0 : index
    %90 = vector.load %arg12[%c0_44, %c0_45] : memref<1x128xf32, #tpu.memory_space<vmem>>, vector<1x128xf32>
    %91 = vector.broadcast %90 : vector<1x128xf32> to vector<8x128xf32>
    %92 = arith.addf %89, %91 : vector<8x128xf32>
    %cst_46 = arith.constant 5.000000e-01 : f32
    %93 = vector.broadcast %cst_46 : f32 to vector<8x128xf32>
    %94 = arith.mulf %93, %92 : vector<8x128xf32>
    %cst_47 = arith.constant 4.471500e-02 : f32
    %95 = vector.broadcast %cst_47 : f32 to vector<8x128xf32>
    %96 = arith.mulf %95, %92 : vector<8x128xf32>
    %97 = arith.mulf %96, %92 : vector<8x128xf32>
    %98 = arith.mulf %97, %92 : vector<8x128xf32>
    %99 = arith.addf %92, %98 : vector<8x128xf32>
    %cst_48 = arith.constant 0.797884583 : f32
    %100 = vector.broadcast %cst_48 : f32 to vector<8x128xf32>
    %101 = arith.mulf %100, %99 : vector<8x128xf32>
    %102 = math.tanh %101 : vector<8x128xf32>
    %cst_49 = arith.constant 1.000000e+00 : f32
    %103 = vector.broadcast %cst_49 : f32 to vector<8x128xf32>
    %104 = arith.addf %103, %102 : vector<8x128xf32>
    %105 = arith.mulf %94, %104 : vector<8x128xf32>
    %106 = arith.truncf %105 : vector<8x128xf32> to vector<8x128xbf16>
    %c0_50 = arith.constant 0 : index
    %c0_51 = arith.constant 0 : index
    %107 = vector.load %arg13[%c0_50, %c0_51] : memref<128x32xbf16, #tpu.memory_space<vmem>>, vector<128x32xbf16>
    %cst_52 = arith.constant dense<0.000000e+00> : vector<8x32xf32>
    %108 = tpu.matmul %106, %107, %cst_52 {dimension_numbers = #tpu.dot_dimension_numbers<[1], [0], [0], [1], [0, 0, 1, 1], [], []>} : vector<8x128xbf16>, vector<128x32xbf16>, vector<8x32xf32> -> vector<8x32xf32>
    %c0_53 = arith.constant 0 : index
    %c0_54 = arith.constant 0 : index
    %109 = vector.load %arg14[%c0_53, %c0_54] : memref<1x32xf32, #tpu.memory_space<vmem>>, vector<1x32xf32>
    %110 = vector.broadcast %109 : vector<1x32xf32> to vector<8x32xf32>
    %111 = arith.addf %108, %110 : vector<8x32xf32>
    %112 = arith.addf %86, %111 : vector<8x32xf32>
    %c0_55 = arith.constant 0 : index
    %c0_56 = arith.constant 0 : index
    %113 = vector.load %arg15[%c0_55, %c0_56] : memref<1x32xf32, #tpu.memory_space<vmem>>, vector<1x32xf32>
    %c0_57 = arith.constant 0 : index
    %c0_58 = arith.constant 0 : index
    %114 = vector.load %arg16[%c0_57, %c0_58] : memref<1x32xf32, #tpu.memory_space<vmem>>, vector<1x32xf32>
    %cst_59 = arith.constant dense<0.000000e+00> : vector<8xf32>
    %115 = vector.multi_reduction <add>, %112, %cst_59 [1] : vector<8x32xf32> to vector<8xf32>
    %116 = vector.shape_cast %115 : vector<8xf32> to vector<8x1xf32>
    %cst_60 = arith.constant 3.200000e+01 : f32
    %117 = vector.broadcast %cst_60 : f32 to vector<8x1xf32>
    %118 = arith.divf %116, %117 : vector<8x1xf32>
    %119 = vector.broadcast %118 : vector<8x1xf32> to vector<8x32xf32>
    %120 = arith.subf %112, %119 : vector<8x32xf32>
    %121 = arith.mulf %120, %120 : vector<8x32xf32>
    %cst_61 = arith.constant dense<0.000000e+00> : vector<8xf32>
    %122 = vector.multi_reduction <add>, %121, %cst_61 [1] : vector<8x32xf32> to vector<8xf32>
    %123 = vector.shape_cast %122 : vector<8xf32> to vector<8x1xf32>
    %cst_62 = arith.constant 3.200000e+01 : f32
    %124 = vector.broadcast %cst_62 : f32 to vector<8x1xf32>
    %125 = arith.divf %123, %124 : vector<8x1xf32>
    %126 = vector.broadcast %118 : vector<8x1xf32> to vector<8x32xf32>
    %127 = arith.subf %112, %126 : vector<8x32xf32>
    %cst_63 = arith.constant 9.99999996E-13 : f32
    %128 = vector.broadcast %cst_63 : f32 to vector<8x1xf32>
    %129 = arith.addf %125, %128 : vector<8x1xf32>
    %130 = math.rsqrt %129 : vector<8x1xf32>
    %131 = vector.broadcast %130 : vector<8x1xf32> to vector<8x32xf32>
    %132 = arith.mulf %127, %131 : vector<8x32xf32>
    %133 = vector.broadcast %113 : vector<1x32xf32> to vector<8x32xf32>
    %134 = arith.mulf %132, %133 : vector<8x32xf32>
    %135 = vector.broadcast %114 : vector<1x32xf32> to vector<8x32xf32>
    %136 = arith.addf %134, %135 : vector<8x32xf32>
    %137 = arith.truncf %136 : vector<8x32xf32> to vector<8x32xbf16>
    %c0_64 = arith.constant 0 : index
    %c0_65 = arith.constant 0 : index
    %c0_66 = arith.constant 0 : index
    %138 = vector.load %arg17[%c0_64, %c0_65, %c0_66] : memref<1x8x32xbf16, #tpu.memory_space<vmem>>, vector<1x8x32xbf16>
    %139 = vector.shape_cast %138 : vector<1x8x32xbf16> to vector<8x32xbf16>
    %140 = vector.shape_cast %137 : vector<8x32xbf16> to vector<1x8x32xbf16>
    tpu.vector_store %arg17[%c0_64, %c0_65, %c0_66], %140 {strides = array<i32>} : memref<1x8x32xbf16, #tpu.memory_space<vmem>>, vector<1x8x32xbf16>,
    %141 = vector.extract_strided_slice %136 {offsets = [7, 0], sizes = [1, 32], strides = [1, 1]} : vector<8x32xf32> to vector<1x32xf32>
    %c0_67 = arith.constant 0 : index
    %c0_68 = arith.constant 0 : index
    %c0_69 = arith.constant 0 : index
    %142 = vector.load %arg18[%c0_67, %c0_68, %c0_69] : memref<1x1x32xf32, #tpu.memory_space<vmem>>, vector<1x1x32xf32>
    %143 = vector.shape_cast %142 : vector<1x1x32xf32> to vector<1x32xf32>
    %144 = vector.shape_cast %141 : vector<1x32xf32> to vector<1x1x32xf32>
    tpu.vector_store %arg18[%c0_67, %c0_68, %c0_69], %144 {strides = array<i32>} : memref<1x1x32xf32, #tpu.memory_space<vmem>>, vector<1x1x32xf32>,
    return
  }
  func.func @transform_0(%arg0: i32) -> (i32, i32, i32) {
    %c0_i32 = arith.constant 0 : i32
    %c0_i32_0 = arith.constant 0 : i32
    %c0_i32_1 = arith.constant 0 : i32
    return %arg0, %c0_i32, %c0_i32_0 : i32, i32, i32
  }
  func.func @transform_1(%arg0: i32) -> (i32, i32, i32) {
    %c0_i32 = arith.constant 0 : i32
    %c0_i32_0 = arith.constant 0 : i32
    %c0_i32_1 = arith.constant 0 : i32
    return %arg0, %c0_i32, %c0_i32_0 : i32, i32, i32
  }
  func.func @transform_2(%arg0: i32) -> (i32, i32) {
    %c0_i32 = arith.constant 0 : i32
    %c0_i32_0 = arith.constant 0 : i32
    %c0_i32_1 = arith.constant 0 : i32
    return %c0_i32, %c0_i32_0 : i32, i32
  }
  func.func @transform_3(%arg0: i32) -> (i32, i32) {
    %c0_i32 = arith.constant 0 : i32
    %c0_i32_0 = arith.constant 0 : i32
    %c0_i32_1 = arith.constant 0 : i32
    return %c0_i32, %c0_i32_0 : i32, i32
  }
  func.func @transform_4(%arg0: i32) -> (i32, i32) {
    %c0_i32 = arith.constant 0 : i32
    %c0_i32_0 = arith.constant 0 : i32
    %c0_i32_1 = arith.constant 0 : i32
    return %c0_i32, %c0_i32_0 : i32, i32
  }
  func.func @transform_5(%arg0: i32) -> (i32, i32) {
    %c0_i32 = arith.constant 0 : i32
    %c0_i32_0 = arith.constant 0 : i32
    %c0_i32_1 = arith.constant 0 : i32
    return %c0_i32, %c0_i32_0 : i32, i32
  }
  func.func @transform_6(%arg0: i32) -> (i32, i32) {
    %c0_i32 = arith.constant 0 : i32
    %c0_i32_0 = arith.constant 0 : i32
    %c0_i32_1 = arith.constant 0 : i32
    return %c0_i32, %c0_i32_0 : i32, i32
  }
  func.func @transform_7(%arg0: i32) -> (i32, i32) {
    %c0_i32 = arith.constant 0 : i32
    %c0_i32_0 = arith.constant 0 : i32
    %c0_i32_1 = arith.constant 0 : i32
    return %c0_i32, %c0_i32_0 : i32, i32
  }
  func.func @transform_8(%arg0: i32) -> (i32, i32) {
    %c0_i32 = arith.constant 0 : i32
    %c0_i32_0 = arith.constant 0 : i32
    %c0_i32_1 = arith.constant 0 : i32
    return %c0_i32, %c0_i32_0 : i32, i32
  }
  func.func @transform_9(%arg0: i32) -> (i32, i32) {
    %c0_i32 = arith.constant 0 : i32
    %c0_i32_0 = arith.constant 0 : i32
    %c0_i32_1 = arith.constant 0 : i32
    return %c0_i32, %c0_i32_0 : i32, i32
  }
  func.func @transform_10(%arg0: i32) -> (i32, i32) {
    %c0_i32 = arith.constant 0 : i32
    %c0_i32_0 = arith.constant 0 : i32
    %c0_i32_1 = arith.constant 0 : i32
    return %c0_i32, %c0_i32_0 : i32, i32
  }
  func.func @transform_11(%arg0: i32) -> (i32, i32) {
    %c0_i32 = arith.constant 0 : i32
    %c0_i32_0 = arith.constant 0 : i32
    %c0_i32_1 = arith.constant 0 : i32
    return %c0_i32, %c0_i32_0 : i32, i32
  }
  func.func @transform_12(%arg0: i32) -> (i32, i32) {
    %c0_i32 = arith.constant 0 : i32
    %c0_i32_0 = arith.constant 0 : i32
    %c0_i32_1 = arith.constant 0 : i32
    return %c0_i32, %c0_i32_0 : i32, i32
  }
  func.func @transform_13(%arg0: i32) -> (i32, i32) {
    %c0_i32 = arith.constant 0 : i32
    %c0_i32_0 = arith.constant 0 : i32
    %c0_i32_1 = arith.constant 0 : i32
    return %c0_i32, %c0_i32_0 : i32, i32
  }
  func.func @transform_14(%arg0: i32) -> (i32, i32) {
    %c0_i32 = arith.constant 0 : i32
    %c0_i32_0 = arith.constant 0 : i32
    %c0_i32_1 = arith.constant 0 : i32
    return %c0_i32, %c0_i32_0 : i32, i32
  }
  func.func @transform_15(%arg0: i32) -> (i32, i32) {
    %c0_i32 = arith.constant 0 : i32
    %c0_i32_0 = arith.constant 0 : i32
    %c0_i32_1 = arith.constant 0 : i32
    return %c0_i32, %c0_i32_0 : i32, i32
  }
  func.func @transform_16(%arg0: i32) -> (i32, i32, i32) {
    %c0_i32 = arith.constant 0 : i32
    %c0_i32_0 = arith.constant 0 : i32
    %c0_i32_1 = arith.constant 0 : i32
    return %arg0, %c0_i32, %c0_i32_0 : i32, i32, i32
  }
  func.func @transform_17(%arg0: i32) -> (i32, i32, i32) {
    %c0_i32 = arith.constant 0 : i32
    %c0_i32_0 = arith.constant 0 : i32
    %c0_i32_1 = arith.constant 0 : i32
    return %arg0, %c0_i32, %c0_i32_0 : i32, i32, i32
  }
}

</mosaic_0001>

<bundles_post_ra>
// kernel: electra_classifier_forward.3
= control target key start
LH: loop header
LB: loop body
LE: loop exit
PB: predicated region body
PF: predicated region fallthrough
CT: control target
= control target key end

     0   :  { %v142_v1 = vmov 0.0   ;;  %vm143_vm0 = vmmov 0   ;;  %s180_s0 = inlined_call_operand.vmem [shape: f32[2,32], index: 0, kind: input, shape index: {}]   ;;  %s181_s1 = inlined_call_operand.vmem [shape: bf16[32,128], index: 1, kind: input, shape index: {}]   ;;  %s182_s2 = inlined_call_operand.vmem [shape: f32[1,128], index: 2, kind: input, shape index: {}]   ;;  %s183_s3 = inlined_call_operand.hbm [shape: f32[2,128], index: 3, kind: output, shape index: {}]  }
   0x1   :  { %v118_v0 = vld [vmem:[%s181_s1 + $0x8] sm:$0xff]   ;;  %107 = vmatprep.subr.bf16.mxu0 %v142_v1  ;;  %v119_v2 = vld [vmem:[%s181_s1] sm:$0xff]   ;;  %111 = vmatprep.mubr.msk.bf16.mxu0 %vm143_vm0, %v142_v1 }
   0x2   :  { %108 = vmatpush3.bf16.msra.mxu0 %v118_v0  ;;  %v16_v3 = vld [vmem:[%s180_s0] sm:$0x3] }
   0x3   :  { %109 = vmatprep.subr.bf16.mxu0 %v142_v1 }
   0x4   :  { %8 = vsyncpa [#allocation3], 0  ;;  %v22_v4 = vpack.c.bf16 %v16_v3, %v16_v3  ;;  %vm41_vm1 = vcmask 261120   ;;  %v100_v5 = vld [vmem:[%s182_s2] ss:$0 sm:$0xff]  ;;  %s144_s20 = smov [#allocation2]  }
   0x5   :  { %s92_s21 = sshll.u32 %s144_s20, 4  ;;  %s93_s21 = int_to_ptr.vmem [resolvable:$true] %s92_s21 }
   0x6   :  { %110 = vmatpush3.bf16.msra.mxu0 %v119_v2  ;;  %s120_s1 = scalar_lea.vmem %s93_s21, 32  ;;  %p125_p1 = scmp.lt.s32.totalorder %s93_s21, %s93_s21 }
   0x7   :  { %p121_p0 = scmp.ne.s32.totalorder %s93_s21, %s120_s1  ;;  %p126_p2 = scmp.lt.s32.totalorder %s120_s1, %s120_s1 }
   0x9   :  { %112 = vmatmul.mubr.msk.bf16.vlgmr.msra.gmra.mxu0 %vm41_vm1, %v22_v4  ;;  %p127_p3 = por %p126_p2, %p125_p1 }
   0xb   :  { %p128_p4 = pnand %p127_p3, %p121_p0 }
  0xc9   :  { %v79_v6 = vpop.f32.mrf.mxu0 }
  0xca   :  { %v80_v7 = vadd.f32 %v100_v5, %v79_v6 }
  0xcb   :  { %v113_v8 = vpop.f32.mrf.mxu0 }
  0xcc   :  { %85 = vst [vmem:[#allocation2] sm:$0x3] %v80_v7 }
  0xcd   :  { %v82_v9 = vpop.f32.mrf.mxu0 }
  0xce   :  { %131 = shalt.err (!%p128_p4)
}
  0xcf   :  { %95 = dma.vmem_to_hbm [thread:$0]  %s93_s21, 32, %s183_s3, [#allocation3]   ;;  %v114_v10 = vpop.f32.mrf.mxu0 }
  0xd0   :  { %140 = dma.done.wait [#allocation3], 32  }
  0xd1   :  { %141 = vsyncadd [#allocation3], 4294967264 }
  0xd2   :  { %99 = vsyncpa [#allocation3], 1 }

// kernel: electra_classifier_forward.2
= control target key start
LH: loop header
LB: loop body
LE: loop exit
PB: predicated region body
PF: predicated region fallthrough
CT: control target
= control target key end

     0   :  { %s1914_s0 = inlined_call_operand.vmem [shape: f32[2,8,32], index: 0, kind: input, shape index: {}]   ;;  %s1915_s1 = inlined_call_operand.vmem [shape: f32[2,1,8], index: 1, kind: input, shape index: {}]   ;;  %s1916_s2 = inlined_call_operand.vmem [shape: f32[1,32], index: 2, kind: input, shape index: {}]   ;;  %s1917_s3 = inlined_call_operand.vmem [shape: f32[1,32], index: 3, kind: input, shape index: {}]   ;;  %s1918_s4 = inlined_call_operand.vmem [shape: bf16[32,32], index: 4, kind: input, shape index: {}]   ;;  %s1919_s5 = inlined_call_operand.vmem [shape: bf16[32,32], index: 5, kind: input, shape index: {}]   ;;  %s1920_s6 = inlined_call_operand.vmem [shape: bf16[32,32], index: 6, kind: input, shape index: {}]   ;;  %s1921_s7 = inlined_call_operand.vmem [shape: bf16[32,32], index: 7, kind: input, shape index: {}]   ;;  %s1922_s8 = inlined_call_operand.vmem [shape: f32[1,32], index: 8, kind: input, shape index: {}]   ;;  %s1923_s9 = inlined_call_operand.vmem [shape: f32[1,32], index: 9, kind: input, shape index: {}]   ;;  %s1924_s10 = inlined_call_operand.vmem [shape: bf16[32,128], index: 10, kind: input, shape index: {}]   ;;  %s1925_s11 = inlined_call_operand.vmem [shape: f32[1,128], index: 11, kind: input, shape index: {}]   ;;  %s1926_s12 = inlined_call_operand.vmem [shape: bf16[128,32], index: 12, kind: input, shape index: {}]   ;;  %s1927_s13 = inlined_call_operand.vmem [shape: f32[1,32], index: 13, kind: input, shape index: {}]   ;;  %s1928_s14 = inlined_call_operand.vmem [shape: f32[1,32], index: 14, kind: input, shape index: {}]   ;;  %s1929_s15 = inlined_call_operand.vmem [shape: f32[1,32], index: 15, kind: input, shape index: {}]   ;;  %s1930_s16 = inlined_call_operand.hbm [shape: bf16[2,8,32], index: 16, kind: output, shape index: {0}]   ;;  %s1931_s17 = inlined_call_operand.vmem [shape: f32[2,1,32], index: 17, kind: output, shape index: {1}]  }
   0x1   :  { %1933 = sst [smem:[#allocation7_spill]] %s1914_s0 }
   0x2   :  { %1934 = sst [smem:[#allocation8_spill]] %s1915_s1 }
   0x3   :  { %1935 = sst [smem:[#allocation9_spill]] %s1916_s2 }
   0x4   :  { %1936 = sst [smem:[#allocation10_spill]] %s1917_s3 }
   0x5   :  { %1937 = sst [smem:[#allocation11_spill]] %s1918_s4 }
   0x6   :  { %1938 = sst [smem:[#allocation12_spill]] %s1919_s5 }
   0x7   :  { %1939 = sst [smem:[#allocation13_spill]] %s1920_s6 }
   0x8   :  { %1940 = sst [smem:[#allocation14_spill]] %s1921_s7 }
   0x9   :  { %23 = vsyncpa [#allocation3], 0 }
   0xa   :  { %25 = vsyncpa [#allocation3 + $0x1], 0  ;;  %s1681_s24 = smov 0   ;;  %s1683_s25 = smov 0  }
   0xb   :  { %s1685_s26 = smov 0   ;;  %s1687_s27 = smov 0  }
   0xc LB: > { %1941 = sst [smem:[#allocation5_spill]] %s1582_s26  ;;  %s1702_s28 = sadd.s32 4294967295, %s1586_s27   ;;  %s1586_s27 = sphi %s1687_s27, %s1957_s27   ;;  %s1582_s26 = sphi %s1685_s26, %s1954_s26   ;;  %s1578_s25 = sphi %s1683_s25, %s1956_s25   ;;  %s1574_s24 = sphi %s1681_s24, %s1955_s24  }
   0xd   : > { %s1312_s29 = sadd.s32 4294967294, %s1586_s27   ;;  %s1706_s0 = sadd.s32 1, %s1586_s27  }
   0xe   : > { %s384_s30 = sadd.s32 1, %s1582_s26  ;;  %s381_s18 = ssub.s32 %s1586_s27, %s1706_s0 }
   0xf   : > { %p394_p0 = scmp.ne.s32.totalorder %s1582_s26, %s1578_s25  ;;  %p382_p1 = scmp.eq.s32.totalorder %s381_s18, 0 }
  0x10   : > { %p395_p2 = scmp.eq.s32.totalorder %s1702_s28, 1  ;;  %p400_p3 = scmp.ne.s32.totalorder %s1578_s25, %s1574_s24 }
  0x11   : > { %p401_p4 = scmp.eq.s32.totalorder %s1312_s29, 1  ;;  %p1315_p7 = scmp.ge.s32.totalorder %s1586_s27, 1 }
  0x12   : > { %s1717_s19 = scalar_select %p382_p1, %s1582_s26, %s384_s30  }
  0x13   : > { %p1719_p5 = por %p395_p2, %p394_p0  ;;  %p1723_p6 = por %p401_p4, %p400_p3 }
  0x14   : > { %1942 = sst [smem:[#allocation6_spill]] %s1717_s19  ;;  %p500_p8 = scmp.lt.s32.totalorder %s1586_s27, 3 }
  0x16   : > { %p501_p9 = pnand %p1315_p7, %p500_p8 }
  0x17   : > { %p557_p10 = scmp.lt.s32.totalorder (!%p501_p9), %s1702_s28, 1  ;;  %s1945_s30 = sld [smem:[#allocation7_spill]] (!%p501_p9) }
  0x18   : > { %504 = sbr.rel (%p501_p9) target bundleno = 2511 (0x9cf), region = 84  ;;  %s1946_s4 = sld [smem:[#allocation11_spill]] (!%p501_p9) }
  0x19   : > { %s1947_s2 = sld [smem:[#allocation9_spill]] (!%p501_p9) }
  0x1a   : > { %s1948_s3 = sld [smem:[#allocation10_spill]] (!%p501_p9) }
  0x1b   : > { %s1949_s5 = sld [smem:[#allocation12_spill]] (!%p501_p9) }
  0x1c   : > { %s1950_s6 = sld [smem:[#allocation13_spill]] (!%p501_p9) }
  0x1d   : > { %s1731_s21 = scalar_select %p557_p10, %s1702_s28, 1  ;;  %vm571_vm0 = vcmask 261120   ;;  %v1588_v8 = vmov 0.0   ;;  %vm1589_vm1 = vmmov 0   ;;  %vm848_vm2 = vcmask 1043456  }
  0x1e   : > { %v1496_v7 = vld [vmem:[%s1946_s4 + $0x8] sm:$0xff]   ;;  %1383 = vmatprep.subr.bf16.mxu0 %v1588_v8  ;;  %1387 = vmatprep.mubr.msk.bf16.mxu0 %vm1589_vm1, %v1588_v8  ;;  %v1497_v9 = vld [vmem:[%s1946_s4] sm:$0xff]   ;;  %s1951_s26 = sld [smem:[#allocation8_spill]]  ;;  %v825_v41 = vlaneseq  ;;  %vm831_vm3 = vcmask 64512   ;;  %vm1203_vm4 = vcmask 261127   ;;  %s1352_s4 = sshll.u32 %s1702_s28, 6 }
  0x1f   : > { %s1317_s22 = sshll.u32 %s1731_s21, 3  ;;  %1384 = vmatpush3.bf16.msra.mxu0 %v1496_v7  ;;  %1407 = vmatprep.subr.bf16.mxu1 %v1588_v8  ;;  %v1318_v14 = vld [vmem:[%s1947_s2] ss:$0 sm:$0xff]  ;;  %s1952_s7 = sld [smem:[#allocation14_spill]]  ;;  %vm1201_vm5 = vcmask 257024  }
  0x20   : > { %s560_s18 = scalar_lea.vmem %s1945_s30, %s1317_s22  ;;  %1385 = vmatprep.subr.bf16.mxu0 %v1588_v8  ;;  %1409 = vmatprep.mubr.msk.bf16.mxu1 %vm1589_vm1, %v1588_v8  ;;  %v1319_v16 = vld [vmem:[%s1948_s3] ss:$0 sm:$0xff]  ;;  %v826_v44 = vshrl.u32 %v825_v41, 7  ;;  %s566_s3 = scalar_lea.vmem %s1931_s17, %s1731_s21 }
  0x21   : > { %v568_v0 = vld [vmem:[%s560_s18] sm:$0xff]  ;;  %v1498_v19 = vld [vmem:[%s1949_s5 + $0x8] sm:$0xff]   ;;  %s549_s18 = sand.u32 1, %s1578_s25  }
  0x22   : > { %v572_v1 = vsel %vm571_vm0, %v568_v0, 0.0  ;;  %v1499_v21 = vld [vmem:[%s1949_s5] sm:$0xff]   ;;  %v1500_v22 = vld [vmem:[%s1950_s6 + $0x8] sm:$0xff]   ;;  %v827_v46 = vsub.s32 0, %v826_v44  ;;  %s1316_s22 = sshll.u32 %s549_s18, 2 }
  0x23   : > { %573 = vadd.xlane.f32.xlu0 %v572_v1  ;;  %1386 = vmatpush3.bf16.msra.mxu0 %v1497_v9  ;;  %v1501_v23 = vld [vmem:[%s1950_s6] sm:$0xff]   ;;  %s551_s5 = scalar_lea.vmem [#allocation2], %s1316_s22 }
  0x24   : > { %1391 = vmatprep.subr.bf16.mxu0 %v1588_v8  ;;  %s563_s19 = scalar_lea.vmem %s1951_s26, %s1731_s21  ;;  %s1222_s6 = sshll.u32 %s551_s5, 4  ;;  %s1223_s6 = int_to_ptr.vmem [resolvable:$true] %s1222_s6 }
  0x25   : > { %v821_v42 = vld [vmem:[%s563_s19] sm:$0x1]  ;;  %v1502_v60 = vld [vmem:[%s1952_s7 + $0x8] sm:$0xff]   ;;  %s1206_s26 = scalar_lea.sflag [#allocation3], %s549_s18  ;;  %s1526_s19 = scalar_lea.vmem %s1223_s6, 64 }
  0x26   : > { %v822_v43 = vsub.f32 1.0, %v821_v42  ;;  %v1503_v61 = vld [vmem:[%s1952_s7] sm:$0xff]   ;;  %s1220_s7 = scalar_lea.hbm %s1930_s16, %s1352_s4  ;;  %p1527_p11 = scmp.ne.s32.totalorder %s1223_s6, %s1526_s19 }
  0x27   : > { %s1590_s21 = smov [#allocation2]  }
  0x28   : > { %v823_v45 = vmul.f32 -1e+09, %v822_v43  ;;  %p1528_p12 = pnand %p1527_p11, %p1719_p5  ;;  %s1530_s28 = sshll.u32 %s1590_s21, 4  ;;  %s1531_s28 = int_to_ptr.vmem [resolvable:$false] %s1530_s28 }
  0x29   : > { %s1532_s22 = scalar_lea.vmem %s1531_s28, 128  ;;  %p1533_p0 = scmp.lt.s32.totalorder %s1223_s6, %s1531_s28 }
  0x2a   : > { %v828_v47 = vrot.slane %v823_v45, %v827_v46  ;;  %p1529_p13 = pneg %p1528_p12  ;;  %p1534_p1 = scmp.lt.s32.totalorder %s1532_s22, %s1526_s19 }
  0x2c   : > { %p1535_p2 = por %p1534_p1, %p1533_p0 }
  0x2e   : > { %p1536_p3 = pnand %p1535_p2, %p1529_p13 }
  0xac   : > { %v574_v2 = vpop.xlane.xlu0 %573 }
  0xad   : > { %v576_v3 = vmul.f32 0.03125, %v574_v2 }
  0xaf   : > { %v577_v4 = vsub.f32 %v568_v0, %v576_v3 }
  0xb1   : > { %v578_v5 = vmul.f32 %v577_v4, %v577_v4 }
  0xb3   : > { %v579_v6 = vsel %vm571_vm0, %v578_v5, 0.0 }
  0xb4   : > { %580 = vadd.xlane.f32.xlu0 %v579_v6 }
 0x13d   : > { %v581_v10 = vpop.xlane.xlu0 %580 }
 0x13e   : > { %v582_v11 = vmul.f32 0.03125, %v581_v10 }
 0x140   : > { %v583_v12 = vadd.f32 1e-12, %v582_v11 }
 0x142   : > { %1514 = vrsqrt.f32 %v583_v12 }
 0x14f   : > { %v1515_v13 = vpop.eup %1514 }
 0x150   : > { %v585_v15 = vmul.f32 %v1515_v13, %v577_v4 }
 0x152   : > { %v592_v17 = vmul.f32 %v1318_v14, %v585_v15 }
 0x154   : > { %v1759_v18 = vadd.f32 %v1319_v16, %v592_v17 }
 0x156   : > { %v600_v20 = vpack.c.bf16 %v1759_v18, %v1759_v18 }
 0x158   : > { %1388 = vmatmul.mubr.msk.bf16.vlgmr.msra.gmra.mxu0 %vm571_vm0, %v600_v20 }
 0x159   : > { %1392 = vmatpush3.bf16.msra.mxu0 %v1498_v19  ;;  %1395 = vmatprep.mubr.msk.bf16.mxu0 %vm1589_vm1, %v1588_v8 }
 0x15a   : > { %1393 = vmatprep.subr.bf16.mxu0 %v1588_v8 }
 0x15d   : > { %1394 = vmatpush3.bf16.msra.mxu0 %v1499_v21 }
 0x15e   : > { %1399 = vmatprep.subr.bf16.mxu0 %v1588_v8 }
 0x160   : > { %1396 = vmatmul.mubr.msk.bf16.vlgmr.msra.gmra.mxu0 %vm571_vm0, %v600_v20 }
 0x161   : > { %1400 = vmatpush3.bf16.msra.mxu0 %v1500_v22  ;;  %1403 = vmatprep.mubr.msk.bf16.mxu0 %vm1589_vm1, %v1588_v8 }
 0x162   : > { %1401 = vmatprep.subr.bf16.mxu0 %v1588_v8 }
 0x165   : > { %1402 = vmatpush3.bf16.msra.mxu0 %v1501_v23 }
 0x166   : > { %1413 = vmatprep.subr.bf16.mxu0 %v1588_v8 }
 0x168   : > { %1404 = vmatmul.mubr.msk.bf16.vlgmr.msra.gmra.mxu0 %vm571_vm0, %v600_v20  ;;  %v1504_v20 = vld [vmem:[%s1924_s10 + $0x8] sm:$0xff]  }
 0x169   : > { %1415 = vmatprep.mubr.msk.bf16.mxu0 %vm1589_vm1, %v1588_v8 }
 0x218   : > { %v654_v24 = vpop.f32.mrf.mxu0 }
 0x219   : > { %v772_v35 = vpack.c.bf16 %v654_v24, %v654_v24 }
 0x21a   : > { %v1389_v25 = vpop.f32.mrf.mxu0 }
 0x21b   : > { %v1334_v25 = vld [vmem:[%s1922_s8] ss:$0 sm:$0xff] }
 0x21c   : > { %v657_v26 = vpop.f32.mrf.mxu0 }
 0x21e   : > { %v1390_v27 = vpop.f32.mrf.mxu0 }
 0x21f   : > { %v1335_v27 = vld [vmem:[%s1923_s9] ss:$0 sm:$0xff] }
 0x220   : > { %v710_v28 = vpop.f32.mrf.mxu0 }
 0x221   : > { %v773_v29 = vpack.c.bf16 %v710_v28, %v710_v28 }
 0x222   : > { %v1397_v30 = vpop.f32.mrf.mxu0 }
 0x223   : > { %v778_v31 = vsel %vm571_vm0, %v773_v29, 0 }
 0x224   : > { %v713_v32 = vpop.f32.mrf.mxu0  ;;  %1408 = vmatpush3.bf16.xpose.msra.mxu1 %v778_v31  ;;  %v1506_v31 = vld [vmem:[%s1926_s12 + $0x38] sm:$0xff]  }
 0x225   : > { %1419 = vmatprep.subr.bf16.mxu1 %v1588_v8  ;;  %v1507_v32 = vld [vmem:[%s1926_s12 + $0x30] sm:$0xff]  }
 0x226   : > { %v1398_v33 = vpop.f32.mrf.mxu0 }
 0x227   : > { %v1508_v33 = vld [vmem:[%s1926_s12 + $0x28] sm:$0xff]  }
 0x228   : > { %v766_v34 = vpop.f32.mrf.mxu0 }
 0x229   : > { %v844_v36 = vpack.c.bf16 %v766_v34, %v766_v34  ;;  %v1509_v34 = vld [vmem:[%s1926_s12 + $0x20] sm:$0xff]  }
 0x22a   : > { %v1405_v37 = vpop.f32.mrf.mxu0 }
 0x22b   : > { %v850_v38 = vsel %vm848_vm2, %v844_v36, 0  ;;  %1410 = vmatmul.mubr.msk.bf16.vlgmr.msra.gmra.mxu1 %vm571_vm0, %v772_v35  ;;  %v1510_v35 = vld [vmem:[%s1926_s12 + $0x18] sm:$0xff]   ;;  %v1511_v36 = vld [vmem:[%s1926_s12 + $0x10] sm:$0xff]   ;;  %v1512_v37 = vld [vmem:[%s1926_s12 + $0x8] sm:$0xff]  }
 0x22c   : > { %v769_v39 = vpop.f32.mrf.mxu0  ;;  %1414 = vmatpush3.bf16.msra.mxu0 %v850_v38  ;;  %1423 = vmatprep.mubr.msk.bf16.mxu1 %vm1589_vm1, %v1588_v8  ;;  %v1513_v38 = vld [vmem:[%s1926_s12] sm:$0xff]  }
 0x22d   : > { %1427 = vmatprep.subr.bf16.mxu0 %v1588_v8  ;;  %1420 = vmatpush3.bf16.msra.mxu1 %v1502_v60  ;;  %v1336_v39 = vld [vmem:[%s1925_s11] ss:$0 sm:$0xff] }
 0x22e   : > { %v1406_v40 = vpop.f32.mrf.mxu0  ;;  %1421 = vmatprep.subr.bf16.mxu1 %v1588_v8 }
 0x231   : > { %1422 = vmatpush3.bf16.msra.mxu1 %v1503_v61 }
 0x232   : > { %1435 = vmatprep.subr.bf16.mxu1 %v1588_v8 }
 0x2eb   : > { %v814_v48 = vpop.f32.mrf.mxu1 }
 0x2ec   : > { %v820_v49 = vmul.f32 0.17677669, %v814_v48 }
 0x2ed   : > { %v1411_v50 = vpop.f32.mrf.mxu1 }
 0x2ee   : > { %v830_v51 = vadd.f32 %v828_v47, %v820_v49 }
 0x2ef   : > { %v817_v52 = vpop.f32.mrf.mxu1 }
 0x2f0   : > { %v832_v53 = vsel %vm831_vm3, %v830_v51, -inf }
 0x2f1   : > { %833 = vmax.xlane.f32.xlu1 %v832_v53  ;;  %v1412_v54 = vpop.f32.mrf.mxu1 }
 0x2f2   : > { %v1340_v54 = vld [vmem:[%s1927_s13] ss:$0 sm:$0xff] }
 0x37a   : > { %v834_v55 = vpop.xlane.xlu1 %833 }
 0x37b   : > { %v835_v56 = vsub.f32 %v830_v51, %v834_v55 }
 0x37d   : > { %v836_v57 = vmul.f32 1.442695, %v835_v56 }
 0x37f   : > { %1516 = vpow2.f32 %v836_v57 }
 0x38c   : > { %v1517_v58 = vpop.eup %1516 }
 0x38d   : > { %v838_v59 = vsel %vm831_vm3, %v1517_v58, 0.0 }
 0x38e   : > { %839 = vadd.xlane.f32.xlu1 %v838_v59 }
 0x417   : > { %v840_v62 = vpop.xlane.xlu1 %839 }
 0x418   : > { %1518 = vrcp.f32 %v840_v62 }
 0x425   : > { %v1519_v63 = vpop.eup %1518 }
 0x426   : > { %v842_v0 = vmul.f32 %v1519_v63, %v1517_v58 }
 0x428   : > { %v843_v1 = vpack.c.bf16 %v842_v0, %v842_v0 }
 0x42a   : > { %1416 = vmatmul.mubr.msk.bf16.vlgmr.msra.gmra.mxu0 %vm831_vm3, %v843_v1 }
 0x42b   : > { %1431 = vmatprep.mubr.msk.bf16.mxu0 %vm1589_vm1, %v1588_v8  ;;  %1428 = vmatpush3.bf16.msra.mxu0 %v1504_v20 }
 0x42c   : > { %1429 = vmatprep.subr.bf16.mxu0 %v1588_v8 }
 0x4ea   : > { %v886_v2 = vpop.f32.mrf.mxu0 }
 0x4eb   : > { %v892_v3 = vpack.c.bf16 %v886_v2, %v886_v2 }
 0x4ec   : > { %v1417_v4 = vpop.f32.mrf.mxu0 }
 0x4ed   : > { %1424 = vmatmul.mubr.msk.bf16.vlgmr.msra.gmra.mxu1 %vm571_vm0, %v892_v3 }
 0x4ee   : > { %v889_v5 = vpop.f32.mrf.mxu0  ;;  %1451 = vmatprep.mubr.msk.bf16.mxu1 %vm1589_vm1, %v1588_v8  ;;  %1436 = vmatpush3.bf16.msra.mxu1 %v1506_v31 }
 0x4ef   : > { %1437 = vmatprep.subr.bf16.mxu1 %v1588_v8 }
 0x4f0   : > { %v1418_v6 = vpop.f32.mrf.mxu0 }
 0x4f2   : > { %1438 = vmatpush3.bf16.msra.mxu1 %v1507_v32 }
 0x4f3   : > { %1439 = vmatprep.subr.bf16.mxu1 %v1588_v8 }
 0x4f6   : > { %1440 = vmatpush3.bf16.msra.mxu1 %v1508_v33 }
 0x4f7   : > { %1441 = vmatprep.subr.bf16.mxu1 %v1588_v8 }
 0x4fa   : > { %1442 = vmatpush3.bf16.msra.mxu1 %v1509_v34 }
 0x4fb   : > { %1443 = vmatprep.subr.bf16.mxu1 %v1588_v8 }
 0x4fe   : > { %1444 = vmatpush3.bf16.msra.mxu1 %v1510_v35 }
 0x4ff   : > { %1445 = vmatprep.subr.bf16.mxu1 %v1588_v8 }
 0x502   : > { %1446 = vmatpush3.bf16.msra.mxu1 %v1511_v36 }
 0x503   : > { %1447 = vmatprep.subr.bf16.mxu1 %v1588_v8 }
 0x506   : > { %1448 = vmatpush3.bf16.msra.mxu1 %v1512_v37 }
 0x507   : > { %1449 = vmatprep.subr.bf16.mxu1 %v1588_v8 }
 0x50a   : > { %1450 = vmatpush3.bf16.msra.mxu1 %v1513_v38 }
 0x5ad   : > { %v946_v7 = vpop.f32.mrf.mxu1 }
 0x5ae   : > { %v952_v9 = vadd.f32 %v946_v7, %v1759_v18  ;;  %v1505_v18 = vld [vmem:[%s1924_s10] sm:$0xff]  }
 0x5af   : > { %v1425_v10 = vpop.f32.mrf.mxu1  ;;  %1430 = vmatpush3.bf16.msra.mxu0 %v1505_v18  ;;  %v1349_v7 = vld [vmem:[%s1928_s14] ss:$0 sm:$0xff] }
 0x5b0   : > { %v955_v11 = vsel %vm571_vm0, %v952_v9, 0.0  ;;  %v1350_v10 = vld [vmem:[%s1929_s15] ss:$0 sm:$0xff] }
 0x5b1   : > { %956 = vadd.xlane.f32.xlu0 %v955_v11  ;;  %v949_v12 = vpop.f32.mrf.mxu1 }
 0x5b3   : > { %v1426_v13 = vpop.f32.mrf.mxu1 }
 0x63a   : > { %v957_v14 = vpop.xlane.xlu0 %956 }
 0x63b   : > { %v958_v15 = vmul.f32 0.03125, %v957_v14 }
 0x63d   : > { %v959_v16 = vsub.f32 %v952_v9, %v958_v15 }
 0x63f   : > { %v960_v17 = vmul.f32 %v959_v16, %v959_v16 }
 0x641   : > { %v961_v19 = vsel %vm571_vm0, %v960_v17, 0.0 }
 0x642   : > { %962 = vadd.xlane.f32.xlu1 %v961_v19 }
 0x6cb   : > { %v963_v21 = vpop.xlane.xlu1 %962 }
 0x6cc   : > { %v964_v22 = vmul.f32 0.03125, %v963_v21 }
 0x6ce   : > { %v965_v23 = vadd.f32 1e-12, %v964_v22 }
 0x6d0   : > { %1520 = vrsqrt.f32 %v965_v23 }
 0x6dd   : > { %v1521_v24 = vpop.eup %1520 }
 0x6de   : > { %v967_v26 = vmul.f32 %v1521_v24, %v959_v16 }
 0x6e0   : > { %v974_v28 = vmul.f32 %v1334_v25, %v967_v26 }
 0x6e2   : > { %v981_v29 = vadd.f32 %v1335_v27, %v974_v28 }
 0x6e4   : > { %v982_v30 = vpack.c.bf16 %v981_v29, %v981_v29 }
 0x6e6   : > { %1432 = vmatmul.mubr.msk.bf16.vlgmr.msra.gmra.mxu0 %vm571_vm0, %v982_v30 }
 0x7a6   : > { %v1043_v40 = vpop.f32.mrf.mxu0 }
 0x7a7   : > { %v1044_v41 = vadd.f32 %v1336_v39, %v1043_v40 }
 0x7a8   : > { %v1433_v42 = vpop.f32.mrf.mxu0 }
 0x7a9   : > { %v1050_v43 = vmul.f32 0.044715, %v1044_v41  ;;  %v1049_v51 = vmul.f32 0.5, %v1044_v41 }
 0x7aa   : > { %v1046_v44 = vpop.f32.mrf.mxu0 }
 0x7ab   : > { %v1051_v45 = vmul.f32 %v1050_v43, %v1044_v41 }
 0x7ac   : > { %v1434_v46 = vpop.f32.mrf.mxu0 }
 0x7ad   : > { %v1052_v47 = vmul.f32 %v1051_v45, %v1044_v41 }
 0x7af   : > { %v1053_v48 = vadd.f32 %v1052_v47, %v1044_v41 }
 0x7b1   : > { %v1054_v49 = vmul.f32 0.7978846, %v1053_v48 }
 0x7b3   : > { %1522 = vtanh.f32 %v1054_v49 }
 0x7c0   : > { %v1523_v50 = vpop.eup %1522 }
 0x7c1   : > { %v1056_v52 = vadd.f32 1.0, %v1523_v50 }
 0x7c3   : > { %v1057_v8 = vmul.f32 %v1056_v52, %v1049_v51 }
 0x7c5   : > { %v1058_v53 = vpack.c.bf16 %v1057_v8, %v1057_v8 }
 0x7c7   : > { %1452 = vmatmul.mubr.bf16.vlgmr.msra.gmra.mxu1 %v1058_v53 }
 0x887   : > { %v1164_v55 = vpop.f32.mrf.mxu1 }
 0x888   : > { %v1165_v56 = vadd.f32 %v1340_v54, %v1164_v55 }
 0x889   : > { %v1453_v57 = vpop.f32.mrf.mxu1 }
 0x88a   : > { %v1170_v58 = vadd.f32 %v1165_v56, %v981_v29 }
 0x88b   : > { %v1167_v59 = vpop.f32.mrf.mxu1 }
 0x88c   : > { %v1173_v60 = vsel %vm571_vm0, %v1170_v58, 0.0 }
 0x88d   : > { %1174 = vadd.xlane.f32.xlu0 %v1173_v60  ;;  %v1454_v61 = vpop.f32.mrf.mxu1 }
 0x916   : > { %v1175_v62 = vpop.xlane.xlu0 %1174 }
 0x917   : > { %v1176_v63 = vmul.f32 0.03125, %v1175_v62 }
 0x919   : > { %v1177_v0 = vsub.f32 %v1170_v58, %v1176_v63 }
 0x91b   : > { %v1178_v1 = vmul.f32 %v1177_v0, %v1177_v0 }
 0x91d   : > { %v1179_v2 = vsel %vm571_vm0, %v1178_v1, 0.0 }
 0x91e   : > { %1180 = vadd.xlane.f32.xlu1 %v1179_v2 }
 0x9a7   : > { %v1181_v3 = vpop.xlane.xlu1 %1180 }
 0x9a8   : > { %v1182_v4 = vmul.f32 0.03125, %v1181_v3 }
 0x9aa   : > { %v1183_v5 = vadd.f32 1e-12, %v1182_v4 }
 0x9ac   : > { %1524 = vrsqrt.f32 %v1183_v5 }
 0x9b9   : > { %v1525_v6 = vpop.eup %1524 }
 0x9ba   : > { %v1185_v9 = vmul.f32 %v1525_v6, %v1177_v0 }
 0x9bc   : > { %v1192_v11 = vmul.f32 %v1349_v7, %v1185_v9 }
 0x9be   : > { %v1199_v12 = vadd.f32 %v1350_v10, %v1192_v11 }
 0x9c0   : > { %v1200_v13 = vpack.c.bf16 %v1199_v12, %v1199_v12  ;;  %1204 = vst.msk [vmem:[%s566_s3 - $0x7] sm:$0x80] %vm1203_vm4, %v1199_v12 }
 0x9c2   : > { %1202 = vst.msk [vmem:[%s551_s5] sm:$0xf] %vm1201_vm5, %v1200_v13 }
 0x9c3   : > { %1539 = shalt.err (!%p1536_p3)
}
 0x9c4   : > { %s1540_s3 = scalar_lea.hbm %s1220_s7, 64  ;;  %s1544_s18 = scalar_lea.hbm %s1930_s16, 128 }
 0x9c5   : > { %p1541_p4 = scmp.ne.s32.totalorder %s1220_s7, %s1540_s3  ;;  %p1545_p9 = scmp.lt.s32.totalorder %s1220_s7, %s1930_s16 }
 0x9c6   : > { %p1546_p10 = scmp.lt.s32.totalorder %s1544_s18, %s1540_s3 }
 0x9c7   : > { %p1542_p7 = pnand %p1541_p4, %p1719_p5 }
 0x9c8   : > { %p1547_p11 = por %p1546_p10, %p1545_p9 }
 0x9c9   : > { %p1543_p8 = pneg %p1542_p7 }
 0x9cb   : > { %p1548_p12 = pnand %p1547_p11, %p1543_p8 }
 0x9cd   : > { %1551 = shalt.err (!%p1548_p12)
}
 0x9ce   : > { %1455 = dma.vmem_to_hbm [thread:$0]  (%p1719_p5), %s1223_s6, 64, %s1220_s7, %s1206_s26  }
 0x9cf PF: > { %p1461_p13 = scmp.ge.s32.totalorder %s1586_s27, 2  ;;  %s1237_s23 = sand.u32 1, %s1574_s24  }
 0x9d0   : > { %s1238_s2 = scalar_lea.sflag [#allocation3], %s1237_s23 }
 0x9d1   : > { %p1458_p0 = pnand %p1461_p13, %p1723_p6 }
 0x9d3   : > { %p1459_p1 = pneg %p1458_p0 }
 0x9d5   : > { %1569 = dma.done.wait (%p1459_p1), %s1238_s2, 64  }
 0x9d6   : > { %1571 = vsyncadd (%p1459_p1), %s1238_s2, 4294967232  ;;  %s1953_s19 = sld [smem:[#allocation5_spill]]  ;;  %p28_p2 = scmp.ge.s32.totalorder %s1706_s0, 4  }
 0x9d7   : > { %s1954_s26 = sld [smem:[#allocation6_spill]]  ;;  %s1955_s24 = smov %s1578_s25 }
 0x9d8   : > { %s1957_s27 = smov %s1706_s0  ;;  %30 = sbr.rel (!%p28_p2) target bundleno = 12 (0xc), region = 134 }
 0x9dc   : > { %s1956_s25 = smov %s1953_s19 }
 0x9dd   :  { %1249 = vsyncpa [#allocation3], 1 }
 0x9de   :  { %1251 = vsyncpa [#allocation3 + $0x1], 1 }

</bundles_post_ra>
